<compile_context>
chip_gen: v6e
topology: v6e:2x2x1
jax: 0.10.0
libtpu: 0.0.40
codegen_flags: <defaults>
</compile_context>

<pallas_src>
import jax
import jax.numpy as jnp
from jax.experimental import pallas as pl
from jax.experimental.pallas import tpu as pltpu

_LANE_BASE = 128
_TILE_BYTES_TARGET = 4 * 1024 * 1024  # ~4 MiB per input tile


def _fadein_kernel(alpha_ref, x0_ref, x1_ref, o_ref):
    # alpha_ref: (1, 1) f32 scalar in SMEM. Compute in the input dtype and
    # cast the result explicitly on store.
    a = alpha_ref[0, 0].astype(x0_ref.dtype)
    one = jnp.asarray(1, dtype=x0_ref.dtype)
    o_ref[...] = (x0_ref[...] * (one - a) + x1_ref[...] * a).astype(o_ref.dtype)


def _choose_lane(total: int) -> int:
    # Widest lane-dense last dim (multiple of 128, up to 1024) that divides
    # the element count pad-free; fall back to 128 (with minimal padding).
    for k in (8, 4, 2, 1):
        lane = _LANE_BASE * k
        if total % lane == 0:
            return lane
    return _LANE_BASE


def fadein(x0: jax.Array, x1: jax.Array, alpha) -> jax.Array:
    """Blend x0 and x1: x0*(1-alpha) + x1*alpha, computed in a Pallas kernel."""
    assert x0.shape == x1.shape and x0.dtype == x1.dtype
    orig_shape = x0.shape
    total = x0.size
    itemsize = jnp.dtype(x0.dtype).itemsize

    lane = _choose_lane(total)
    padded = total if total % lane == 0 else pl.cdiv(total, lane) * lane
    rows = padded // lane

    def to_slab(x):
        flat = x.reshape(-1)
        if padded != total:  # rare: only when total isn't a multiple of 128
            flat = jnp.pad(flat, (0, padded - total))
        return flat.reshape(rows, lane)

    # Tile rows: target ~_TILE_BYTES_TARGET bytes per input tile, rounded down
    # to a multiple of 32 (covers f32/bf16/int8 sublane packing).
    tile_rows = (_TILE_BYTES_TARGET // (lane * itemsize)) // 32 * 32
    tile_rows = max(32, tile_rows)
    if rows <= tile_rows:
        tile_rows = rows          # single (possibly small) block: full-dim block
        grid = (1,)
    else:
        grid = (pl.cdiv(rows, tile_rows),)   # partial boundary block is OK

    x0s, x1s = to_slab(x0), to_slab(x1)
    alpha_arr = jnp.asarray(alpha, dtype=jnp.float32).reshape(1, 1)

    out_slab = pl.pallas_call(
        _fadein_kernel,
        out_shape=jax.ShapeDtypeStruct((rows, lane), x0.dtype),
        grid=grid,
        in_specs=[
            pl.BlockSpec(memory_space=pltpu.SMEM),              # alpha scalar
            pl.BlockSpec((tile_rows, lane), lambda i: (i, 0)),  # x0 tile
            pl.BlockSpec((tile_rows, lane), lambda i: (i, 0)),  # x1 tile
        ],
        out_specs=pl.BlockSpec((tile_rows, lane), lambda i: (i, 0)),
        compiler_params=pltpu.CompilerParams(
            dimension_semantics=("parallel",),
            vmem_limit_bytes=48 * 1024 * 1024,
        ),
    )(alpha_arr, x0s, x1s)

    out_flat = out_slab.reshape(-1)
    if padded != total:
        out_flat = out_flat[:total]
    return out_flat.reshape(orig_shape)


class FadeinPallas:
    """Mirror of the PyTorch Fadein module; forward runs the Pallas kernel."""

    def __init__(self, alpha=0.0):
        self.alpha = float(alpha)

    def update_alpha(self, delta):
        self.alpha = max(0.0, min(self.alpha + delta, 1.0))

    def get_alpha(self):
        return self.alpha

    def __call__(self, x):
        # x is a pair/sequence of two same-shape arrays, like the torch module.
        return fadein(x[0], x[1], self.alpha)


if __name__ == "__main__":
    key = jax.random.PRNGKey(0)
    k0, k1, k2, k3 = jax.random.split(key, 4)

    # Small NCHW inputs, f32
    x0 = jax.random.normal(k0, (2, 4, 16, 16), dtype=jnp.float32)
    x1 = jax.random.normal(k1, (2, 4, 16, 16), dtype=jnp.float32)

    module = FadeinPallas(alpha=0.3)
    out = module((x0, x1))
    out = jax.block_until_ready(out)

    ref = x0 * (1.0 - 0.3) + x1 * 0.3
    assert out.shape == x0.shape
    assert jnp.allclose(out, ref, atol=1e-6), "f32 mismatch vs reference"

    # Also exercise the explicit output-dtype cast with bf16 inputs.
    y0 = jax.random.normal(k2, (2, 4, 16, 16), dtype=jnp.bfloat16)
    y1 = jax.random.normal(k3, (2, 4, 16, 16), dtype=jnp.bfloat16)
    out_bf16 = jax.block_until_ready(fadein(y0, y1, 0.7))
    ref_bf16 = (y0.astype(jnp.float32) * 0.3 + y1.astype(jnp.float32) * 0.7)
    assert out_bf16.dtype == jnp.bfloat16
    assert jnp.allclose(out_bf16.astype(jnp.float32), ref_bf16, atol=2e-2), \
        "bf16 mismatch vs reference"

    print("KERNEL_OK")
</pallas_src>

<mosaic_0001>
module attributes {stable_mosaic.version = 11 : i64} {
  func.func @_fadein_kernel(%arg0: i32, %arg1: memref<1x1xf32, #tpu.memory_space<smem>>, %arg2: memref<2x1024xf32, #tpu.memory_space<vmem>>, %arg3: memref<2x1024xf32, #tpu.memory_space<vmem>>, %arg4: memref<2x1024xf32, #tpu.memory_space<vmem>>) attributes {dimension_semantics = [#tpu.dimension_semantics<parallel>], iteration_bounds = array<i64: 1>, scalar_prefetch = 0 : i64, scratch_operands = 0 : i64, tpu.core_type = #tpu.core_type<tc>, window_params = [{transform_indices = @transform_0, window_bounds = array<i64: 1, 1>}, {transform_indices = @transform_1, window_bounds = array<i64: 2, 1024>}, {transform_indices = @transform_2, window_bounds = array<i64: 2, 1024>}, {transform_indices = @transform_3, window_bounds = array<i64: 2, 1024>}]} {
    %c0 = arith.constant 0 : index
    %c0_0 = arith.constant 0 : index
    %0 = memref.load %arg1[%c0, %c0_0] : memref<1x1xf32, #tpu.memory_space<smem>>
    %c0_1 = arith.constant 0 : index
    %c0_2 = arith.constant 0 : index
    %1 = vector.load %arg2[%c0_1, %c0_2] : memref<2x1024xf32, #tpu.memory_space<vmem>>, vector<2x1024xf32>
    %cst = arith.constant 1.000000e+00 : f32
    %2 = arith.subf %cst, %0 : f32
    %3 = vector.broadcast %2 : f32 to vector<2x1024xf32>
    %4 = arith.mulf %1, %3 : vector<2x1024xf32>
    %c0_3 = arith.constant 0 : index
    %c0_4 = arith.constant 0 : index
    %5 = vector.load %arg3[%c0_3, %c0_4] : memref<2x1024xf32, #tpu.memory_space<vmem>>, vector<2x1024xf32>
    %6 = vector.broadcast %0 : f32 to vector<2x1024xf32>
    %7 = arith.mulf %5, %6 : vector<2x1024xf32>
    %8 = arith.addf %4, %7 : vector<2x1024xf32>
    %c0_5 = arith.constant 0 : index
    %c0_6 = arith.constant 0 : index
    %9 = vector.load %arg4[%c0_5, %c0_6] : memref<2x1024xf32, #tpu.memory_space<vmem>>, vector<2x1024xf32>
    tpu.vector_store %arg4[%c0_5, %c0_6], %8 {strides = array<i32>} : memref<2x1024xf32, #tpu.memory_space<vmem>>, vector<2x1024xf32>,
    return
  }
  func.func @transform_0(%arg0: i32) -> (i32, i32) {
    %c0_i32 = arith.constant 0 : i32
    %c0_i32_0 = arith.constant 0 : i32
    %c0_i32_1 = arith.constant 0 : i32
    return %c0_i32, %c0_i32_0 : i32, i32
  }
  func.func @transform_1(%arg0: i32) -> (i32, i32) {
    %c0_i32 = arith.constant 0 : i32
    %c0_i32_0 = arith.constant 0 : i32
    return %arg0, %c0_i32 : i32, i32
  }
  func.func @transform_2(%arg0: i32) -> (i32, i32) {
    %c0_i32 = arith.constant 0 : i32
    %c0_i32_0 = arith.constant 0 : i32
    return %arg0, %c0_i32 : i32, i32
  }
  func.func @transform_3(%arg0: i32) -> (i32, i32) {
    %c0_i32 = arith.constant 0 : i32
    %c0_i32_0 = arith.constant 0 : i32
    return %arg0, %c0_i32 : i32, i32
  }
}

</mosaic_0001>

<bundles_post_ra>
// kernel: tpu_custom_call.1
= control target key start
LH: loop header
LB: loop body
LE: loop exit
PB: predicated region body
PF: predicated region fallthrough
CT: control target
= control target key end

     0   :  { %9 = vsyncpa [#allocation4], 0  ;;  %s179_s0 = inlined_call_operand.<no memory space> [shape: f32[1,1], index: 0, kind: input, shape index: {}]   ;;  %s180_s1 = inlined_call_operand.hbm [shape: f32[2,1024], index: 1, kind: input, shape index: {}]   ;;  %s181_s2 = inlined_call_operand.hbm [shape: f32[2,1024], index: 2, kind: input, shape index: {}]   ;;  %s182_s3 = inlined_call_operand.hbm [shape: f32[2,1024], index: 3, kind: output, shape index: {}]  }
   0x1   :  { %10 = vsyncpa [#allocation7], 0 }
   0x2   :  { %11 = vsyncpa [#allocation5], 0  ;;  %s141_s12 = smov [#allocation3]   ;;  %s142_s14 = smov [#allocation6]  }
   0x3   :  { %s20_s13 = sshll.u32 %s141_s12, 4  ;;  %s30_s15 = sshll.u32 %s142_s14, 4  ;;  %s21_s13 = int_to_ptr.vmem [resolvable:$true] %s20_s13  ;;  %s31_s15 = int_to_ptr.vmem [resolvable:$true] %s30_s15 }
   0x4   :  { %s83_s16 = scalar_lea.vmem %s21_s13, 256  ;;  %p88_p1 = scmp.lt.s32.totalorder %s21_s13, %s21_s13 }
   0x5   :  { %p84_p0 = scmp.ne.s32.totalorder %s21_s13, %s83_s16  ;;  %p89_p2 = scmp.lt.s32.totalorder %s83_s16, %s83_s16 }
   0x7   :  { %p90_p3 = por %p89_p2, %p88_p1 }
   0x9   :  { %p91_p4 = pnand %p90_p3, %p84_p0 }
   0xb   :  { %94 = shalt.err (!%p91_p4)
}
   0xc   :  { %23 = dma.hbm_to_vmem [thread:$0]  %s180_s1, 256, %s21_s13, [#allocation4]  }
   0xd   :  { %s103_s19 = scalar_lea.vmem %s31_s15, 256  ;;  %p108_p6 = scmp.lt.s32.totalorder %s31_s15, %s31_s15 }
   0xe   :  { %p104_p5 = scmp.ne.s32.totalorder %s31_s15, %s103_s19  ;;  %p109_p7 = scmp.lt.s32.totalorder %s103_s19, %s103_s19 }
  0x10   :  { %p110_p8 = por %p109_p7, %p108_p6 }
  0x12   :  { %p111_p9 = pnand %p110_p8, %p104_p5 }
  0x14   :  { %114 = shalt.err (!%p111_p9)
}
  0x15   :  { %33 = dma.hbm_to_vmem [thread:$0]  %s181_s2, 256, %s31_s15, [#allocation7]  }
  0x16   :  { %135 = dma.done.wait [#allocation4], 256  }
  0x17   :  { %136 = vsyncadd [#allocation4], 4294967040 }
  0x18   :  { %137 = dma.done.wait [#allocation7], 256  }
  0x19   :  { %138 = vsyncadd [#allocation7], 4294967040  ;;  %s43_s24 = ssub.f32 1.0, %s179_s0  ;;  %v49_v1 = vstv %s179_s0  ;;  %v41_v2 = vld [vmem:[#allocation3] sm:$0xff]  ;;  %v47_v3 = vld [vmem:[#allocation6] sm:$0xff]  ;;  %s143_s2 = smov [#allocation8]  }
  0x1a   :  { %v42_v4 = vld [vmem:[#allocation3 + $0x8] sm:$0xff]  ;;  %v50_v6 = vmul.f32 %v49_v1, %v47_v3  ;;  %v48_v8 = vld [vmem:[#allocation6 + $0x8] sm:$0xff]  ;;  %s62_s26 = sshll.u32 %s143_s2, 4  ;;  %s63_s26 = int_to_ptr.vmem [resolvable:$true] %s62_s26 }
  0x1b   :  { %v44_v0 = vstv %s43_s24  ;;  %v51_v9 = vmul.f32 %v49_v1, %v48_v8  ;;  %s115_s27 = scalar_lea.vmem %s63_s26, 256  ;;  %p120_p11 = scmp.lt.s32.totalorder %s63_s26, %s63_s26 }
  0x1c   :  { %v45_v5 = vmul.f32 %v44_v0, %v41_v2  ;;  %v46_v7 = vmul.f32 %v44_v0, %v42_v4  ;;  %p116_p10 = scmp.ne.s32.totalorder %s63_s26, %s115_s27  ;;  %p121_p12 = scmp.lt.s32.totalorder %s115_s27, %s115_s27 }
  0x1e   :  { %v52_v10 = vadd.f32 %v50_v6, %v45_v5  ;;  %v53_v11 = vadd.f32 %v51_v9, %v46_v7  ;;  %p122_p13 = por %p121_p12, %p120_p11 }
  0x20   :  { %54 = vst [vmem:[#allocation8] sm:$0xff] %v52_v10  ;;  %55 = vst [vmem:[#allocation8 + $0x8] sm:$0xff] %v53_v11  ;;  %p123_p0 = pnand %p122_p13, %p116_p10 }
  0x22   :  { %126 = shalt.err (!%p123_p0)
}
  0x23   :  { %65 = dma.vmem_to_hbm [thread:$0]  %s63_s26, 256, %s182_s3, [#allocation5]  }
  0x24   :  { %139 = dma.done.wait [#allocation5], 256  }
  0x25   :  { %140 = vsyncadd [#allocation5], 4294967040 }
  0x26   :  { %69 = vsyncpa [#allocation4], 1 }
  0x27   :  { %70 = vsyncpa [#allocation7], 1 }
  0x28   :  { %71 = vsyncpa [#allocation5], 1 }

</bundles_post_ra>
